<compile_context>
chip_gen: v7x
topology: tpu7x:2x2x1
jax: 0.10.0
libtpu: 0.0.40
codegen_flags: <defaults>
</compile_context>

<pallas_src>
import math
import functools

import jax
import jax.numpy as jnp
from jax.experimental import pallas as pl
from jax.experimental.pallas import tpu as pltpu


def _round_up(v, m):
    return (v + m - 1) // m * m


def ffn_kernel(x_ref, w_ref, b_ref, o_ref, acc_ref):
    # x_ref: (TM, TK), w_ref: (TK, TN), b_ref: (1, TN), o_ref: (TM, TN), acc: (TM, TN) f32
    k = pl.program_id(2)

    @pl.when(k == 0)
    def _init():
        acc_ref[...] = jnp.zeros_like(acc_ref)

    acc_ref[...] += jnp.dot(
        x_ref[...], w_ref[...], preferred_element_type=jnp.float32
    )

    @pl.when(k == pl.num_programs(2) - 1)
    def _finalize():
        # Bias add + ReLU once per output tile, in f32, then cast to output dtype.
        y = acc_ref[...] + b_ref[...].astype(jnp.float32)
        o_ref[...] = jnp.maximum(y, 0.0).astype(o_ref.dtype)


def position_wise_feedforward(x, w_t, bias, *, tm=512, tn=256, tk=512,
                              mxu_dtype=None):
    """Eval-mode PositionWiseFeedforward: relu(dropout(x) @ W.T + b), dropout=identity.

    x:    (..., E_in)
    w_t:  (E_in, E_out)  -- torch weight already transposed ONCE outside this call.
    bias: (E_out,)
    mxu_dtype: optional narrower dtype (e.g. jnp.bfloat16 on v6e/v7x) for the MXU
               operands; accumulation stays f32 and output keeps x.dtype.
    """
    orig_shape = x.shape
    E_in = orig_shape[-1]
    E_out = w_t.shape[1]
    x2d = x.reshape(-1, E_in)
    M = x2d.shape[0]

    # Lane/sublane alignment: last dim multiple of 128, second-to-last multiple of 8.
    M_pad = _round_up(M, 8)
    Ei_pad = _round_up(E_in, 128)
    Eo_pad = _round_up(E_out, 128)

    # Clamp tiles to the (aligned) problem size, then pad so tiles divide evenly.
    TM = min(tm, M_pad)
    TK = min(tk, Ei_pad)
    TN = min(tn, Eo_pad)
    M_pad = _round_up(M_pad, TM)
    Ei_pad = _round_up(Ei_pad, TK)
    Eo_pad = _round_up(Eo_pad, TN)

    in_dtype = mxu_dtype if mxu_dtype is not None else x.dtype
    x_p = jnp.pad(x2d, ((0, M_pad - M), (0, Ei_pad - E_in))).astype(in_dtype)
    w_p = jnp.pad(w_t, ((0, Ei_pad - E_in), (0, Eo_pad - E_out))).astype(in_dtype)
    b_p = jnp.pad(bias.reshape(1, E_out), ((0, 0), (0, Eo_pad - E_out)))

    grid = (Eo_pad // TN, M_pad // TM, Ei_pad // TK)  # (j, i, k) ; k (reduction) last

    # VMEM budget: double-buffered inputs + output, plus the f32 accumulator.
    in_item = jnp.dtype(in_dtype).itemsize
    out_item = jnp.dtype(x.dtype).itemsize
    vmem_bytes = (2 * (TM * TK + TK * TN + TN) * in_item
                  + 2 * TM * TN * out_item
                  + TM * TN * 4)
    vmem_limit = int(min(max(2 * vmem_bytes, 32 * 1024 * 1024), 48 * 1024 * 1024))

    cost = pl.CostEstimate(
        flops=2 * M_pad * Ei_pad * Eo_pad,
        transcendentals=0,
        bytes_accessed=(x_p.size + w_p.size + b_p.size) * in_item
                       + M_pad * Eo_pad * out_item,
    )

    out = pl.pallas_call(
        ffn_kernel,
        out_shape=jax.ShapeDtypeStruct((M_pad, Eo_pad), x.dtype),
        grid_spec=pltpu.PrefetchScalarGridSpec(
            num_scalar_prefetch=0,
            grid=grid,
            in_specs=[
                pl.BlockSpec((TM, TK), lambda j, i, k: (i, k)),   # x tile
                pl.BlockSpec((TK, TN), lambda j, i, k: (k, j)),   # weight tile (reused
                                                                  # across the i sweep
                                                                  # when E_in <= TK)
                pl.BlockSpec((1, TN), lambda j, i, k: (0, j)),    # bias tile
            ],
            out_specs=pl.BlockSpec((TM, TN), lambda j, i, k: (i, j)),
            scratch_shapes=[pltpu.VMEM((TM, TN), jnp.float32)],
        ),
        compiler_params=pltpu.CompilerParams(
            dimension_semantics=("parallel", "parallel", "arbitrary"),
            vmem_limit_bytes=vmem_limit,
        ),
        cost_estimate=cost,
    )(x_p, w_p, b_p)

    out = out[:M, :E_out]
    return out.reshape(*orig_shape[:-1], E_out)


def init_params(key, embed_dim, dtype=jnp.float32):
    """Deterministic init matching the module's init_parameters():
    every parameter ~ U(-1/sqrt(param.size(-1)), +1/sqrt(param.size(-1)))."""
    kw, kb = jax.random.split(key)
    stdv_w = 1.0 / math.sqrt(embed_dim)          # weight shape (E, E) -> size(-1)=E
    stdv_b = 1.0 / math.sqrt(embed_dim)          # bias shape (E,)     -> size(-1)=E
    weight = jax.random.uniform(kw, (embed_dim, embed_dim), dtype,
                                minval=-stdv_w, maxval=stdv_w)
    bias = jax.random.uniform(kb, (embed_dim,), dtype,
                              minval=-stdv_b, maxval=stdv_b)
    return weight, bias


if __name__ == "__main__":
    key = jax.random.PRNGKey(0)
    k_x, k_p, k_x2, k_p2 = jax.random.split(key, 4)

    # --- small demo shape (single padded tile) ---
    batch, seq, embed_dim = 2, 8, 32
    x = jax.random.normal(k_x, (batch, seq, embed_dim), dtype=jnp.float32)
    weight, bias = init_params(k_p, embed_dim)
    w_t = weight.T          # pre-transposed once at parameter-preparation time

    fwd = jax.jit(functools.partial(position_wise_feedforward))
    out = jax.block_until_ready(fwd(x, w_t, bias))

    ref = jnp.maximum(x @ weight.T + bias, 0.0)
    assert out.shape == (batch, seq, embed_dim)
    assert jnp.allclose(out, ref, atol=1e-5, rtol=1e-5)

    # --- larger, non-aligned shape: exercises padding + multi-tile (i) grid ---
    batch2, seq2, embed_dim2 = 4, 300, 192
    x2 = jax.random.normal(k_x2, (batch2, seq2, embed_dim2), dtype=jnp.float32)
    weight2, bias2 = init_params(k_p2, embed_dim2)
    w_t2 = weight2.T
    out2 = jax.block_until_ready(fwd(x2, w_t2, bias2))
    ref2 = jnp.maximum(x2 @ weight2.T + bias2, 0.0)
    assert out2.shape == (batch2, seq2, embed_dim2)
    assert jnp.allclose(out2, ref2, atol=1e-4, rtol=1e-4)

    print("KERNEL_OK")
</pallas_src>

<mosaic_0001>
module attributes {stable_mosaic.version = 11 : i64} {
  func.func @ffn_kernel(%arg0: i32, %arg1: i32, %arg2: i32, %arg3: memref<16x128xf32, #tpu.memory_space<vmem>>, %arg4: memref<128x128xf32, #tpu.memory_space<vmem>>, %arg5: memref<1x128xf32, #tpu.memory_space<vmem>>, %arg6: memref<16x128xf32, #tpu.memory_space<vmem>>, %arg7: memref<16x128xf32, #tpu.memory_space<vmem>>) attributes {dimension_semantics = [#tpu.dimension_semantics<parallel>, #tpu.dimension_semantics<parallel>, #tpu.dimension_semantics<arbitrary>], iteration_bounds = array<i64: 1, 1, 1>, scalar_prefetch = 0 : i64, scratch_operands = 1 : i64, tpu.core_type = #tpu.core_type<tc>, window_params = [{transform_indices = @transform_0, window_bounds = array<i64: 16, 128>}, {transform_indices = @transform_1, window_bounds = array<i64: 128, 128>}, {transform_indices = @transform_2, window_bounds = array<i64: 1, 128>}, {transform_indices = @transform_3, window_bounds = array<i64: 16, 128>}]} {
    %c0_i32 = arith.constant 0 : i32
    %0 = arith.cmpi eq, %arg2, %c0_i32 : i32
    %1 = arith.extui %0 : i1 to i32
    %c0_i32_0 = arith.constant 0 : i32
    %2 = arith.cmpi ne, %1, %c0_i32_0 : i32
    scf.if %2 {
      %cst_10 = arith.constant 0.000000e+00 : f32
      %12 = vector.broadcast %cst_10 : f32 to vector<16x128xf32>
      %c0_11 = arith.constant 0 : index
      %c0_12 = arith.constant 0 : index
      %13 = vector.load %arg7[%c0_11, %c0_12] : memref<16x128xf32, #tpu.memory_space<vmem>>, vector<16x128xf32>
      tpu.vector_store %arg7[%c0_11, %c0_12], %12 {strides = array<i32>} : memref<16x128xf32, #tpu.memory_space<vmem>>, vector<16x128xf32>,
    } else {
    }
    %c0 = arith.constant 0 : index
    %c0_1 = arith.constant 0 : index
    %3 = vector.load %arg7[%c0, %c0_1] : memref<16x128xf32, #tpu.memory_space<vmem>>, vector<16x128xf32>
    %c0_2 = arith.constant 0 : index
    %c0_3 = arith.constant 0 : index
    %4 = vector.load %arg3[%c0_2, %c0_3] : memref<16x128xf32, #tpu.memory_space<vmem>>, vector<16x128xf32>
    %c0_4 = arith.constant 0 : index
    %c0_5 = arith.constant 0 : index
    %5 = vector.load %arg4[%c0_4, %c0_5] : memref<128x128xf32, #tpu.memory_space<vmem>>, vector<128x128xf32>
    %cst = arith.constant dense<0.000000e+00> : vector<16x128xf32>
    %6 = tpu.matmul %4, %5, %cst {dimension_numbers = #tpu.dot_dimension_numbers<[1], [0], [0], [1], [0, 0, 1, 1], [], []>} : vector<16x128xf32>, vector<128x128xf32>, vector<16x128xf32> -> vector<16x128xf32>
    %7 = arith.addf %3, %6 : vector<16x128xf32>
    %c0_6 = arith.constant 0 : index
    %c0_7 = arith.constant 0 : index
    %8 = vector.load %arg7[%c0_6, %c0_7] : memref<16x128xf32, #tpu.memory_space<vmem>>, vector<16x128xf32>
    tpu.vector_store %arg7[%c0_6, %c0_7], %7 {strides = array<i32>} : memref<16x128xf32, #tpu.memory_space<vmem>>, vector<16x128xf32>,
    %c0_i32_8 = arith.constant 0 : i32
    %9 = arith.cmpi eq, %arg2, %c0_i32_8 : i32
    %10 = arith.extui %9 : i1 to i32
    %c0_i32_9 = arith.constant 0 : i32
    %11 = arith.cmpi ne, %10, %c0_i32_9 : i32
    scf.if %11 {
      %c0_10 = arith.constant 0 : index
      %c0_11 = arith.constant 0 : index
      %12 = vector.load %arg7[%c0_10, %c0_11] : memref<16x128xf32, #tpu.memory_space<vmem>>, vector<16x128xf32>
      %c0_12 = arith.constant 0 : index
      %c0_13 = arith.constant 0 : index
      %13 = vector.load %arg5[%c0_12, %c0_13] : memref<1x128xf32, #tpu.memory_space<vmem>>, vector<1x128xf32>
      %14 = vector.broadcast %13 : vector<1x128xf32> to vector<16x128xf32>
      %15 = arith.addf %12, %14 : vector<16x128xf32>
      %cst_14 = arith.constant 0.000000e+00 : f32
      %16 = vector.broadcast %cst_14 : f32 to vector<16x128xf32>
      %17 = arith.maximumf %15, %16 : vector<16x128xf32>
      %c0_15 = arith.constant 0 : index
      %c0_16 = arith.constant 0 : index
      %18 = vector.load %arg6[%c0_15, %c0_16] : memref<16x128xf32, #tpu.memory_space<vmem>>, vector<16x128xf32>
      tpu.vector_store %arg6[%c0_15, %c0_16], %17 {strides = array<i32>} : memref<16x128xf32, #tpu.memory_space<vmem>>, vector<16x128xf32>,
    } else {
    }
    return
  }
  func.func @transform_0(%arg0: i32, %arg1: i32, %arg2: i32) -> (i32, i32) {
    %c0_i32 = arith.constant 0 : i32
    return %arg1, %arg2 : i32, i32
  }
  func.func @transform_1(%arg0: i32, %arg1: i32, %arg2: i32) -> (i32, i32) {
    %c0_i32 = arith.constant 0 : i32
    return %arg2, %arg0 : i32, i32
  }
  func.func @transform_2(%arg0: i32, %arg1: i32, %arg2: i32) -> (i32, i32) {
    %c0_i32 = arith.constant 0 : i32
    %c0_i32_0 = arith.constant 0 : i32
    return %c0_i32, %arg0 : i32, i32
  }
  func.func @transform_3(%arg0: i32, %arg1: i32, %arg2: i32) -> (i32, i32) {
    %c0_i32 = arith.constant 0 : i32
    return %arg1, %arg0 : i32, i32
  }
}

</mosaic_0001>

<bundles_post_ra>
// kernel: position_wise_feedforward.1
= control target key start
LH: loop header
LB: loop body
LE: loop exit
PB: predicated region body
PF: predicated region fallthrough
CT: control target
= control target key end

     0   :  { %s310_s1 = inlined_call_operand.vmem [shape: f32[128,128], index: 1, kind: input, shape index: {}]   ;;  %s311_s0 = inlined_call_operand.vmem [shape: f32[16,128], index: 0, kind: input, shape index: {}]   ;;  %s312_s2 = inlined_call_operand.vmem [shape: f32[1,128], index: 2, kind: input, shape index: {}]   ;;  %s313_s3 = inlined_call_operand.vmem [shape: f32[16,128], index: 3, kind: output, shape index: {}]  }
   0x1   :  { %v24_v0 = vld [vmem:[%s310_s1] sm:$0xff]  ;;  %v25_v1 = vld [vmem:[%s310_s1 + $0x8] sm:$0xff]  ;;  %v26_v2 = vld [vmem:[%s310_s1 + $0x10] sm:$0xff] }
   0x2   :  { %v195_v3 = vpack.c.bf16 %v25_v1, %v24_v0  ;;  %v27_v4 = vld [vmem:[%s310_s1 + $0x18] sm:$0xff]  ;;  %v28_v6 = vld [vmem:[%s310_s1 + $0x20] sm:$0xff]  ;;  %v29_v7 = vld [vmem:[%s310_s1 + $0x28] sm:$0xff] }
   0x3   :  { %v199_v5 = vpack.c.bf16 %v27_v4, %v26_v2  ;;  %v203_v8 = vpack.c.bf16 %v29_v7, %v28_v6  ;;  %v22_v9 = vld [vmem:[%s311_s0] sm:$0xff]  ;;  %v30_v10 = vld [vmem:[%s310_s1 + $0x30] sm:$0xff]  ;;  %v31_v11 = vld [vmem:[%s310_s1 + $0x38] sm:$0xff] }
   0x4   :  { %196 = vmatprep.subr.bf16.mxu0 %v195_v3  ;;  %192 = vmatprep.mubr.f32.mxu0 %v22_v9  ;;  %v207_v12 = vpack.c.bf16 %v31_v11, %v30_v10  ;;  %v32_v13 = vld [vmem:[%s310_s1 + $0x40] sm:$0xff]  ;;  %v33_v14 = vld [vmem:[%s310_s1 + $0x48] sm:$0xff]  ;;  %v34_v16 = vld [vmem:[%s310_s1 + $0x50] sm:$0xff] }
   0x5   :  { %198 = vmatpush3.bf16.msra.mxu0 %v195_v3  ;;  %v211_v15 = vpack.c.bf16 %v33_v14, %v32_v13  ;;  %v35_v17 = vld [vmem:[%s310_s1 + $0x58] sm:$0xff]  ;;  %v36_v19 = vld [vmem:[%s310_s1 + $0x60] sm:$0xff]  ;;  %v37_v20 = vld [vmem:[%s310_s1 + $0x68] sm:$0xff] }
   0x6   :  { %200 = vmatprep.subr.bf16.mxu0 %v199_v5  ;;  %v215_v18 = vpack.c.bf16 %v35_v17, %v34_v16  ;;  %v219_v21 = vpack.c.bf16 %v37_v20, %v36_v19  ;;  %v38_v22 = vld [vmem:[%s310_s1 + $0x70] sm:$0xff]  ;;  %v39_v23 = vld [vmem:[%s310_s1 + $0x78] sm:$0xff]  ;;  %v23_v25 = vld [vmem:[%s311_s0 + $0x8] sm:$0xff] }
   0x7   :  { %v223_v24 = vpack.c.bf16 %v39_v23, %v38_v22  ;;  %v141_v26 = vld [vmem:[%s312_s2] ss:$0 sm:$0xff] }
   0x9   :  { %202 = vmatpush3.bf16.msra.mxu0 %v199_v5 }
   0xa   :  { %204 = vmatprep.subr.bf16.mxu0 %v203_v8 }
   0xd   :  { %206 = vmatpush3.bf16.msra.mxu0 %v203_v8 }
   0xe   :  { %208 = vmatprep.subr.bf16.mxu0 %v207_v12 }
  0x11   :  { %210 = vmatpush3.bf16.msra.mxu0 %v207_v12 }
  0x12   :  { %212 = vmatprep.subr.bf16.mxu0 %v211_v15 }
  0x15   :  { %214 = vmatpush3.bf16.msra.mxu0 %v211_v15 }
  0x16   :  { %216 = vmatprep.subr.bf16.mxu0 %v215_v18 }
  0x19   :  { %218 = vmatpush3.bf16.msra.mxu0 %v215_v18 }
  0x1a   :  { %220 = vmatprep.subr.bf16.mxu0 %v219_v21 }
  0x1d   :  { %222 = vmatpush3.bf16.msra.mxu0 %v219_v21 }
  0x1e   :  { %224 = vmatprep.subr.bf16.mxu0 %v223_v24 }
  0x21   :  { %226 = vmatpush3.bf16.msra.mxu0 %v223_v24 }
  0x24   :  { %193 = vmatmul.mubr.f32.vlgmr.msra.gmra.mrb[0].mxu0 %v23_v25 }
  0xf7   :  { %v194_v27 = vpop.f32.mrb[0].mxu0 }
  0xf8   :  { %v132_v28 = vadd.f32 %v194_v27, %v141_v26  ;;  %v106_v29 = vpop.f32.mrb[1].mxu0 }
  0xf9   :  { %v131_v30 = vadd.f32 %v141_v26, %v106_v29 }
  0xfa   :  { %v134_v31 = vmax.f32 %v132_v28, 0.0 }
  0xfb   :  { %v133_v32 = vmax.f32 %v131_v30, 0.0 }
  0xfc   :  { %136 = vst [vmem:[%s313_s3 + $0x8] sm:$0xff] %v134_v31 }
  0xfd   :  { %135 = vst [vmem:[%s313_s3] sm:$0xff] %v133_v32 }

</bundles_post_ra>
